<compile_context>
chip_gen: v5e
topology: v5e:2x2
jax: 0.10.0
libtpu: 0.0.40
codegen_flags: <defaults>
</compile_context>

<pallas_src>
import math
from functools import partial

import jax
import jax.numpy as jnp
from jax.experimental import pallas as pl
from jax.experimental.pallas import tpu as pltpu


def _round_up(x, m):
    return ((x + m - 1) // m) * m


# ---------------------------------------------------------------------------
# Pallas kernels
# ---------------------------------------------------------------------------
def _noisy_linear_train_kernel(x_ref, wmu_ref, wsig_ref, eout_ref, ein_ref,
                               bmu_ref, bsig_ref, beps_ref, o_ref, acc_ref,
                               *, compute_dtype):
    @pl.when(pl.program_id(2) == 0)
    def _():
        acc_ref[...] = jnp.zeros_like(acc_ref)

    # Reconstruct the factored-noise block: eps = eps_out[:,None] * eps_in[None,:].
    # Elementwise combine stays f32 (v5e VPU has no bf16 ALU); cast only for the MXU.
    w = wmu_ref[...] + wsig_ref[...] * (eout_ref[...] * ein_ref[...])      # [tn, tk]
    acc_ref[...] += jax.lax.dot_general(
        x_ref[...].astype(compute_dtype), w.astype(compute_dtype),
        dimension_numbers=(((1,), (1,)), ((), ())),   # contract both last dims: no transpose copy
        preferred_element_type=jnp.float32)

    @pl.when(pl.program_id(2) == pl.num_programs(2) - 1)
    def _():
        b = bmu_ref[...] + bsig_ref[...] * beps_ref[...]                   # [1, tn]
        o_ref[...] = (acc_ref[...] + b).astype(o_ref.dtype)


def _noisy_linear_eval_kernel(x_ref, wmu_ref, bmu_ref, o_ref, acc_ref,
                              *, compute_dtype):
    @pl.when(pl.program_id(2) == 0)
    def _():
        acc_ref[...] = jnp.zeros_like(acc_ref)

    acc_ref[...] += jax.lax.dot_general(
        x_ref[...].astype(compute_dtype), wmu_ref[...].astype(compute_dtype),
        dimension_numbers=(((1,), (1,)), ((), ())),
        preferred_element_type=jnp.float32)

    @pl.when(pl.program_id(2) == pl.num_programs(2) - 1)
    def _():
        o_ref[...] = (acc_ref[...] + bmu_ref[...]).astype(o_ref.dtype)


# ---------------------------------------------------------------------------
# Wrapper
# ---------------------------------------------------------------------------
def noisy_linear_forward(x, params, training=True, *,
                         tb=None, tn=None, tk=None, compute_dtype=None):
    """x: [B, in_features]. params: dict from init_noisy_linear. Returns [B, out]."""
    B, IN = x.shape
    OUT = params["weight_mu"].shape[0]
    compute_dtype = compute_dtype or x.dtype

    # Tile sizes: (8,128)-aligned, capped so double-buffered weight tiles stay
    # well under the v7x 64 MiB / default 32 MiB scoped-VMEM budget (f32 tiles
    # here are <= 256*512*4 B = 512 KiB each, so the default VMEM limit is fine).
    tb = tb if tb is not None else min(_round_up(B, 8), 128)
    tn = tn if tn is not None else min(_round_up(OUT, 128), 256)
    tk = tk if tk is not None else min(_round_up(IN, 128), 512)

    Bp, Np, Kp = _round_up(B, tb), _round_up(OUT, tn), _round_up(IN, tk)

    def pad2(a, rows, cols):
        return jnp.pad(a, ((0, rows - a.shape[0]), (0, cols - a.shape[1])))

    x_p = pad2(x, Bp, Kp)
    wmu_p = pad2(params["weight_mu"], Np, Kp)
    bmu_p = pad2(params["bias_mu"][None, :], 1, Np)

    grid = (Bp // tb, Np // tn, Kp // tk)
    x_spec = pl.BlockSpec((tb, tk), lambda i, j, k: (i, k))
    w_spec = pl.BlockSpec((tn, tk), lambda i, j, k: (j, k))
    bias_spec = pl.BlockSpec((1, tn), lambda i, j, k: (0, j))
    out_spec = pl.BlockSpec((tb, tn), lambda i, j, k: (i, j))

    if training:
        wsig_p = pad2(params["weight_sigma"], Np, Kp)
        eout_p = pad2(params["weight_eps_out"][:, None], Np, 1)
        ein_p = pad2(params["weight_eps_in"][None, :], 1, Kp)
        bsig_p = pad2(params["bias_sigma"][None, :], 1, Np)
        beps_p = pad2(params["bias_epsilon"][None, :], 1, Np)
        args = (x_p, wmu_p, wsig_p, eout_p, ein_p, bmu_p, bsig_p, beps_p)
        in_specs = [x_spec, w_spec, w_spec,
                    pl.BlockSpec((tn, 1), lambda i, j, k: (j, 0)),
                    pl.BlockSpec((1, tk), lambda i, j, k: (0, k)),
                    bias_spec, bias_spec, bias_spec]
        kernel = partial(_noisy_linear_train_kernel, compute_dtype=compute_dtype)
        n_weight_mats = 2
    else:
        args = (x_p, wmu_p, bmu_p)
        in_specs = [x_spec, w_spec, bias_spec]
        kernel = partial(_noisy_linear_eval_kernel, compute_dtype=compute_dtype)
        n_weight_mats = 1

    itemsize = jnp.dtype(x.dtype).itemsize
    cost = pl.CostEstimate(
        flops=2 * B * IN * OUT,
        transcendentals=0,
        bytes_accessed=itemsize * (B * IN + n_weight_mats * OUT * IN
                                   + B * OUT + 4 * OUT + IN),
    )

    out_p = pl.pallas_call(
        kernel,
        out_shape=jax.ShapeDtypeStruct((Bp, Np), x.dtype),
        grid_spec=pltpu.PrefetchScalarGridSpec(
            num_scalar_prefetch=0,
            grid=grid,
            in_specs=in_specs,
            out_specs=out_spec,
            scratch_shapes=[pltpu.VMEM((tb, tn), jnp.float32)],
        ),
        compiler_params=pltpu.CompilerParams(
            dimension_semantics=("parallel", "parallel", "arbitrary")),
        cost_estimate=cost,
    )(*args)

    return out_p[:B, :OUT]


# ---------------------------------------------------------------------------
# Deterministic parameter construction (mirrors reset_parameters / reset_noise)
# ---------------------------------------------------------------------------
def _scale_noise(key, size):
    x = jax.random.normal(key, (size,), dtype=jnp.float32)
    return jnp.sign(x) * jnp.sqrt(jnp.abs(x))


def init_noisy_linear(key, in_features, out_features, std_init=0.5):
    k_wmu, k_bmu, k_ein, k_eout, k_beps = jax.random.split(key, 5)
    mu_range = 1.0 / math.sqrt(in_features)

    weight_mu = jax.random.uniform(
        k_wmu, (out_features, in_features), jnp.float32, -mu_range, mu_range)
    weight_sigma = jnp.full((out_features, in_features),
                            std_init / math.sqrt(in_features), jnp.float32)
    bias_mu = jax.random.uniform(
        k_bmu, (out_features,), jnp.float32, -mu_range, mu_range)
    bias_sigma = jnp.full((out_features,),
                          std_init / math.sqrt(out_features), jnp.float32)

    # Factored noise is kept factored; weight_epsilon = outer(eps_out, eps_in)
    # is never materialized or DMAed (rebuilt per-tile inside the kernel).
    eps_in = _scale_noise(k_ein, in_features)
    eps_out = _scale_noise(k_eout, out_features)
    # Per the reference PyTorch module, bias_epsilon is an independent fresh draw.
    bias_epsilon = _scale_noise(k_beps, out_features)

    return dict(weight_mu=weight_mu, weight_sigma=weight_sigma,
                weight_eps_in=eps_in, weight_eps_out=eps_out,
                bias_mu=bias_mu, bias_sigma=bias_sigma,
                bias_epsilon=bias_epsilon)


# ---------------------------------------------------------------------------
# Pure-JAX reference for correctness check
# ---------------------------------------------------------------------------
def noisy_linear_ref(x, p, training=True):
    if training:
        w_eps = jnp.outer(p["weight_eps_out"], p["weight_eps_in"])
        w = p["weight_mu"] + p["weight_sigma"] * w_eps
        b = p["bias_mu"] + p["bias_sigma"] * p["bias_epsilon"]
    else:
        w, b = p["weight_mu"], p["bias_mu"]
    return x @ w.T + b


# ---------------------------------------------------------------------------
if __name__ == "__main__":
    key = jax.random.PRNGKey(0)
    k_param, k_x, k_param2, k_x2 = jax.random.split(key, 4)

    # Small demo shape consistent with the module (single-tile grid after padding).
    B, IN_FEATURES, OUT_FEATURES = 8, 32, 64
    params = init_noisy_linear(k_param, IN_FEATURES, OUT_FEATURES, std_init=0.5)
    x = jax.random.normal(k_x, (B, IN_FEATURES), dtype=jnp.float32)

    y_train = noisy_linear_forward(x, params, training=True)
    y_eval = noisy_linear_forward(x, params, training=False)
    jax.block_until_ready((y_train, y_eval))

    assert y_train.shape == (B, OUT_FEATURES)
    assert jnp.allclose(y_train, noisy_linear_ref(x, params, True), atol=1e-5, rtol=1e-5)
    assert jnp.allclose(y_eval, noisy_linear_ref(x, params, False), atol=1e-5, rtol=1e-5)

    # Multi-tile grid check: exercises K-axis accumulation + parallel B/N tiles.
    B2, IN2, OUT2 = 16, 256, 256
    params2 = init_noisy_linear(k_param2, IN2, OUT2, std_init=0.5)
    x2 = jax.random.normal(k_x2, (B2, IN2), dtype=jnp.float32)
    y2 = noisy_linear_forward(x2, params2, training=True, tb=8, tn=128, tk=128)
    jax.block_until_ready(y2)
    assert jnp.allclose(y2, noisy_linear_ref(x2, params2, True), atol=1e-4, rtol=1e-4)

    print("KERNEL_OK")
</pallas_src>

<mosaic_0001>
module attributes {stable_mosaic.version = 11 : i64} {
  func.func @_noisy_linear_train_kernel(%arg0: i32, %arg1: i32, %arg2: i32, %arg3: memref<8x128xf32, #tpu.memory_space<vmem>>, %arg4: memref<128x128xf32, #tpu.memory_space<vmem>>, %arg5: memref<128x128xf32, #tpu.memory_space<vmem>>, %arg6: memref<128x1xf32, #tpu.memory_space<vmem>>, %arg7: memref<1x128xf32, #tpu.memory_space<vmem>>, %arg8: memref<1x128xf32, #tpu.memory_space<vmem>>, %arg9: memref<1x128xf32, #tpu.memory_space<vmem>>, %arg10: memref<1x128xf32, #tpu.memory_space<vmem>>, %arg11: memref<8x128xf32, #tpu.memory_space<vmem>>, %arg12: memref<8x128xf32, #tpu.memory_space<vmem>>) attributes {dimension_semantics = [#tpu.dimension_semantics<parallel>, #tpu.dimension_semantics<parallel>, #tpu.dimension_semantics<arbitrary>], iteration_bounds = array<i64: 1, 1, 1>, scalar_prefetch = 0 : i64, scratch_operands = 1 : i64, tpu.core_type = #tpu.core_type<tc>, window_params = [{transform_indices = @transform_0, window_bounds = array<i64: 8, 128>}, {transform_indices = @transform_1, window_bounds = array<i64: 128, 128>}, {transform_indices = @transform_2, window_bounds = array<i64: 128, 128>}, {transform_indices = @transform_3, window_bounds = array<i64: 128, 1>}, {transform_indices = @transform_4, window_bounds = array<i64: 1, 128>}, {transform_indices = @transform_5, window_bounds = array<i64: 1, 128>}, {transform_indices = @transform_6, window_bounds = array<i64: 1, 128>}, {transform_indices = @transform_7, window_bounds = array<i64: 1, 128>}, {transform_indices = @transform_8, window_bounds = array<i64: 8, 128>}]} {
    %c0_i32 = arith.constant 0 : i32
    %0 = arith.cmpi eq, %arg2, %c0_i32 : i32
    %1 = arith.extui %0 : i1 to i32
    %c0_i32_0 = arith.constant 0 : i32
    %2 = arith.cmpi ne, %1, %c0_i32_0 : i32
    scf.if %2 {
      %cst_16 = arith.constant 0.000000e+00 : f32
      %20 = vector.broadcast %cst_16 : f32 to vector<8x128xf32>
      %c0_17 = arith.constant 0 : index
      %c0_18 = arith.constant 0 : index
      %21 = vector.load %arg12[%c0_17, %c0_18] : memref<8x128xf32, #tpu.memory_space<vmem>>, vector<8x128xf32>
      tpu.vector_store %arg12[%c0_17, %c0_18], %20 {strides = array<i32>} : memref<8x128xf32, #tpu.memory_space<vmem>>, vector<8x128xf32>,
    } else {
    }
    %c0 = arith.constant 0 : index
    %c0_1 = arith.constant 0 : index
    %3 = vector.load %arg4[%c0, %c0_1] : memref<128x128xf32, #tpu.memory_space<vmem>>, vector<128x128xf32>
    %c0_2 = arith.constant 0 : index
    %c0_3 = arith.constant 0 : index
    %4 = vector.load %arg5[%c0_2, %c0_3] : memref<128x128xf32, #tpu.memory_space<vmem>>, vector<128x128xf32>
    %c0_4 = arith.constant 0 : index
    %c0_5 = arith.constant 0 : index
    %5 = vector.load %arg6[%c0_4, %c0_5] : memref<128x1xf32, #tpu.memory_space<vmem>>, vector<128x1xf32>
    %c0_6 = arith.constant 0 : index
    %c0_7 = arith.constant 0 : index
    %6 = vector.load %arg7[%c0_6, %c0_7] : memref<1x128xf32, #tpu.memory_space<vmem>>, vector<1x128xf32>
    %7 = vector.broadcast %5 : vector<128x1xf32> to vector<128x128xf32>
    %8 = vector.broadcast %6 : vector<1x128xf32> to vector<128x128xf32>
    %9 = arith.mulf %7, %8 : vector<128x128xf32>
    %10 = arith.mulf %4, %9 : vector<128x128xf32>
    %11 = arith.addf %3, %10 : vector<128x128xf32>
    %c0_8 = arith.constant 0 : index
    %c0_9 = arith.constant 0 : index
    %12 = vector.load %arg12[%c0_8, %c0_9] : memref<8x128xf32, #tpu.memory_space<vmem>>, vector<8x128xf32>
    %c0_10 = arith.constant 0 : index
    %c0_11 = arith.constant 0 : index
    %13 = vector.load %arg3[%c0_10, %c0_11] : memref<8x128xf32, #tpu.memory_space<vmem>>, vector<8x128xf32>
    %cst = arith.constant dense<0.000000e+00> : vector<8x128xf32>
    %14 = tpu.matmul %13, %11, %cst {dimension_numbers = #tpu.dot_dimension_numbers<[1], [1], [0], [0], [0, 0, 1, 0], [], []>} : vector<8x128xf32>, vector<128x128xf32>, vector<8x128xf32> -> vector<8x128xf32>
    %15 = arith.addf %12, %14 : vector<8x128xf32>
    %c0_12 = arith.constant 0 : index
    %c0_13 = arith.constant 0 : index
    %16 = vector.load %arg12[%c0_12, %c0_13] : memref<8x128xf32, #tpu.memory_space<vmem>>, vector<8x128xf32>
    tpu.vector_store %arg12[%c0_12, %c0_13], %15 {strides = array<i32>} : memref<8x128xf32, #tpu.memory_space<vmem>>, vector<8x128xf32>,
    %c0_i32_14 = arith.constant 0 : i32
    %17 = arith.cmpi eq, %arg2, %c0_i32_14 : i32
    %18 = arith.extui %17 : i1 to i32
    %c0_i32_15 = arith.constant 0 : i32
    %19 = arith.cmpi ne, %18, %c0_i32_15 : i32
    scf.if %19 {
      %c0_16 = arith.constant 0 : index
      %c0_17 = arith.constant 0 : index
      %20 = vector.load %arg8[%c0_16, %c0_17] : memref<1x128xf32, #tpu.memory_space<vmem>>, vector<1x128xf32>
      %c0_18 = arith.constant 0 : index
      %c0_19 = arith.constant 0 : index
      %21 = vector.load %arg9[%c0_18, %c0_19] : memref<1x128xf32, #tpu.memory_space<vmem>>, vector<1x128xf32>
      %c0_20 = arith.constant 0 : index
      %c0_21 = arith.constant 0 : index
      %22 = vector.load %arg10[%c0_20, %c0_21] : memref<1x128xf32, #tpu.memory_space<vmem>>, vector<1x128xf32>
      %23 = arith.mulf %21, %22 : vector<1x128xf32>
      %24 = arith.addf %20, %23 : vector<1x128xf32>
      %c0_22 = arith.constant 0 : index
      %c0_23 = arith.constant 0 : index
      %25 = vector.load %arg12[%c0_22, %c0_23] : memref<8x128xf32, #tpu.memory_space<vmem>>, vector<8x128xf32>
      %26 = vector.broadcast %24 : vector<1x128xf32> to vector<8x128xf32>
      %27 = arith.addf %25, %26 : vector<8x128xf32>
      %c0_24 = arith.constant 0 : index
      %c0_25 = arith.constant 0 : index
      %28 = vector.load %arg11[%c0_24, %c0_25] : memref<8x128xf32, #tpu.memory_space<vmem>>, vector<8x128xf32>
      tpu.vector_store %arg11[%c0_24, %c0_25], %27 {strides = array<i32>} : memref<8x128xf32, #tpu.memory_space<vmem>>, vector<8x128xf32>,
    } else {
    }
    return
  }
  func.func @transform_0(%arg0: i32, %arg1: i32, %arg2: i32) -> (i32, i32) {
    %c0_i32 = arith.constant 0 : i32
    return %arg0, %arg2 : i32, i32
  }
  func.func @transform_1(%arg0: i32, %arg1: i32, %arg2: i32) -> (i32, i32) {
    %c0_i32 = arith.constant 0 : i32
    return %arg1, %arg2 : i32, i32
  }
  func.func @transform_2(%arg0: i32, %arg1: i32, %arg2: i32) -> (i32, i32) {
    %c0_i32 = arith.constant 0 : i32
    return %arg1, %arg2 : i32, i32
  }
  func.func @transform_3(%arg0: i32, %arg1: i32, %arg2: i32) -> (i32, i32) {
    %c0_i32 = arith.constant 0 : i32
    %c0_i32_0 = arith.constant 0 : i32
    return %arg1, %c0_i32 : i32, i32
  }
  func.func @transform_4(%arg0: i32, %arg1: i32, %arg2: i32) -> (i32, i32) {
    %c0_i32 = arith.constant 0 : i32
    %c0_i32_0 = arith.constant 0 : i32
    return %c0_i32, %arg2 : i32, i32
  }
  func.func @transform_5(%arg0: i32, %arg1: i32, %arg2: i32) -> (i32, i32) {
    %c0_i32 = arith.constant 0 : i32
    %c0_i32_0 = arith.constant 0 : i32
    return %c0_i32, %arg1 : i32, i32
  }
  func.func @transform_6(%arg0: i32, %arg1: i32, %arg2: i32) -> (i32, i32) {
    %c0_i32 = arith.constant 0 : i32
    %c0_i32_0 = arith.constant 0 : i32
    return %c0_i32, %arg1 : i32, i32
  }
  func.func @transform_7(%arg0: i32, %arg1: i32, %arg2: i32) -> (i32, i32) {
    %c0_i32 = arith.constant 0 : i32
    %c0_i32_0 = arith.constant 0 : i32
    return %c0_i32, %arg1 : i32, i32
  }
  func.func @transform_8(%arg0: i32, %arg1: i32, %arg2: i32) -> (i32, i32) {
    %c0_i32 = arith.constant 0 : i32
    return %arg0, %arg1 : i32, i32
  }
}

</mosaic_0001>

<bundles_post_ra>
// kernel: tpu_custom_call.1
= control target key start
LH: loop header
LB: loop body
LE: loop exit
PB: predicated region body
PF: predicated region fallthrough
CT: control target
= control target key end

     0   :  { %13 = vsyncpa [#allocation4], 0  ;;  %s575_s0 = inlined_call_operand.hbm [shape: f32[8,128], index: 0, kind: input, shape index: {}]   ;;  %s576_s1 = inlined_call_operand.vmem [shape: f32[128,128], index: 1, kind: input, shape index: {}]   ;;  %s577_s2 = inlined_call_operand.hbm [shape: f32[128,128], index: 2, kind: input, shape index: {}]   ;;  %s578_s3 = inlined_call_operand.vmem [shape: f32[128,1], index: 3, kind: input, shape index: {}]   ;;  %s579_s4 = inlined_call_operand.vmem [shape: f32[1,128], index: 4, kind: input, shape index: {}]   ;;  %s580_s5 = inlined_call_operand.vmem [shape: f32[1,128], index: 5, kind: input, shape index: {}]   ;;  %s581_s6 = inlined_call_operand.vmem [shape: f32[1,128], index: 6, kind: input, shape index: {}]   ;;  %s582_s7 = inlined_call_operand.vmem [shape: f32[1,128], index: 7, kind: input, shape index: {}]   ;;  %s583_s8 = inlined_call_operand.hbm [shape: f32[8,128], index: 8, kind: output, shape index: {}]  }
   0x1   :  { %14 = vsyncpa [#allocation7], 0 }
   0x2   :  { %15 = vsyncpa [#allocation5], 0  ;;  %s21_s29 = sshll.u32 %s575_s0, 4  ;;  %s389_s30 = smov [#allocation3]   ;;  %s22_s29 = int_to_ptr.hbm [resolvable:$true] %s21_s29 }
   0x3   :  { %s23_s9 = sshll.u32 %s389_s30, 4  ;;  %s33_s12 = sshll.u32 %s577_s2, 4  ;;  %s24_s9 = int_to_ptr.vmem [resolvable:$true] %s23_s9  ;;  %s34_s12 = int_to_ptr.hbm [resolvable:$true] %s33_s12 }
   0x4   :  { %26 = dma.hbm_to_vmem [thread:$0]  %s22_s29, 128, %s24_s9, [#allocation4]  }
   0x5   :  { %s390_s13 = smov [#allocation6]   ;;  %s391_s15 = smov 128  }
   0x6   :  { %s35_s14 = sshll.u32 %s390_s13, 4  ;;  %s392_s16 = smov 8   ;;  %s36_s14 = int_to_ptr.vmem [resolvable:$true] %s35_s14 }
   0x7   :  { %41 = dma.hbm_to_vmem [thread:$0]  %s34_s12, 2048, %s36_s14, [#allocation7], %s391_s15, %s391_s15, %s392_s16  }
   0x8   :  { %383 = dma.done.wait [#allocation4], 128  }
   0x9   :  { %384 = vsyncadd [#allocation4], 4294967168 }
   0xa   :  { %385 = dma.done.wait [#allocation7], 2048  }
   0xb   :  { %386 = vsyncadd [#allocation7], 4294965248  ;;  %v393_v0 = vmov 0   ;;  %v112_v1 = vld [vmem:[%s578_s3 + $0x78] sm:$0xff]  ;;  %v110_v2 = vld [vmem:[%s578_s3 + $0x68] sm:$0xff]  ;;  %s290_s16 = sshll.u32 %s583_s8, 4  ;;  %s291_s16 = int_to_ptr.hbm [resolvable:$true] %s290_s16 }
   0xc   :  { %308 = vset.pattern.permute.xlu1 %v393_v0  ;;  %307 = vset.pattern.permute.xlu0 %v393_v0  ;;  %v108_v3 = vld [vmem:[%s578_s3 + $0x58] sm:$0xff]  ;;  %v111_v4 = vld [vmem:[%s578_s3 + $0x70] sm:$0xff]  ;;  %v109_v5 = vld [vmem:[%s578_s3 + $0x60] sm:$0xff] }
   0xd   :  { %309 = vset.pattern.permute.xlu2 %v393_v0  ;;  %191 = vperm.xlu0 %307, %v112_v1   ;;  %v107_v6 = vld [vmem:[%s578_s3 + $0x50] sm:$0xff]  ;;  %v106_v7 = vld [vmem:[%s578_s3 + $0x48] sm:$0xff]  ;;  %v105_v8 = vld [vmem:[%s578_s3 + $0x40] sm:$0xff] }
   0xe   :  { %181 = vperm.xlu1 %308, %v110_v2   ;;  %171 = vperm.xlu2 %309, %v108_v3   ;;  %v104_v9 = vld [vmem:[%s578_s3 + $0x38] sm:$0xff]  ;;  %v103_v10 = vld [vmem:[%s578_s3 + $0x30] sm:$0xff]  ;;  %v102_v11 = vld [vmem:[%s578_s3 + $0x28] sm:$0xff] }
   0xf   :  { %v101_v12 = vld [vmem:[%s578_s3 + $0x20] sm:$0xff]  ;;  %v100_v13 = vld [vmem:[%s578_s3 + $0x18] sm:$0xff]  ;;  %v99_v14 = vld [vmem:[%s578_s3 + $0x10] sm:$0xff] }
  0x10   :  { %v98_v15 = vld [vmem:[%s578_s3 + $0x8] sm:$0xff]  ;;  %v97_v16 = vld [vmem:[%s578_s3] sm:$0xff]  ;;  %v80_v22 = vld [vmem:[%s576_s1 + $0x78] sm:$0xff] }
  0x11   :  { %v497_v17 = vld [vmem:[%s579_s4] ss:$0 sm:$0xff]  ;;  %v95_v26 = vld [vmem:[#allocation6 + $0x70] sm:$0xff]  ;;  %v94_v30 = vld [vmem:[#allocation6 + $0x68] sm:$0xff] }
  0x12   :  { %v96_v20 = vld [vmem:[#allocation6 + $0x78] sm:$0xff]  ;;  %v79_v32 = vld [vmem:[%s576_s1 + $0x70] sm:$0xff]  ;;  %v93_v37 = vld [vmem:[#allocation6 + $0x60] sm:$0xff] }
  0x13   :  { %v78_v38 = vld [vmem:[%s576_s1 + $0x68] sm:$0xff]  ;;  %v92_v42 = vld [vmem:[#allocation6 + $0x58] sm:$0xff]  ;;  %v91_v48 = vld [vmem:[#allocation6 + $0x50] sm:$0xff] }
  0x14   :  { %v77_v43 = vld [vmem:[%s576_s1 + $0x60] sm:$0xff]  ;;  %v76_v50 = vld [vmem:[%s576_s1 + $0x58] sm:$0xff]  ;;  %v90_v54 = vld [vmem:[#allocation6 + $0x48] sm:$0xff] }
  0x15   :  { %186 = vperm.xlu0 %307, %v111_v4   ;;  %v75_v56 = vld [vmem:[%s576_s1 + $0x50] sm:$0xff]  ;;  %v89_v60 = vld [vmem:[#allocation6 + $0x40] sm:$0xff]  ;;  %v88_v2 = vld [vmem:[#allocation6 + $0x38] sm:$0xff] }
  0x16   :  { %176 = vperm.xlu1 %308, %v109_v5   ;;  %166 = vperm.xlu2 %309, %v107_v6   ;;  %v74_v61 = vld [vmem:[%s576_s1 + $0x48] sm:$0xff]  ;;  %v73_v4 = vld [vmem:[%s576_s1 + $0x40] sm:$0xff] }
  0x1d   :  { %161 = vperm.xlu0 %307, %v106_v7  }
  0x1e   :  { %156 = vperm.xlu1 %308, %v105_v8   ;;  %151 = vperm.xlu2 %309, %v104_v9   ;;  %v87_v8 = vld [vmem:[#allocation6 + $0x30] sm:$0xff] }
  0x25   :  { %146 = vperm.xlu0 %307, %v103_v10   ;;  %v72_v10 = vld [vmem:[%s576_s1 + $0x38] sm:$0xff] }
  0x26   :  { %141 = vperm.xlu1 %308, %v102_v11   ;;  %136 = vperm.xlu2 %309, %v101_v12  }
  0x2d   :  { %131 = vperm.xlu0 %307, %v100_v13  }
  0x2e   :  { %126 = vperm.xlu1 %308, %v99_v14   ;;  %121 = vperm.xlu2 %309, %v98_v15   ;;  %v86_v14 = vld [vmem:[#allocation6 + $0x28] sm:$0xff] }
  0x2f   :  { %v71_v15 = vld [vmem:[%s576_s1 + $0x30] sm:$0xff] }
  0x35   :  { %116 = vperm.xlu0 %307, %v97_v16  }
  0x68   :  { %v172_v29 = vpop.permute.xlu2 %171 }
  0x69   :  { %v208_v39 = vmul.f32 %v497_v17, %v172_v29  ;;  %v69_v29 = vld [vmem:[%s576_s1 + $0x20] sm:$0xff] }
  0x6b   :  { %v224_v45 = vmul.f32 %v208_v39, %v92_v42  ;;  %v82_v39 = vld [vmem:[#allocation6 + $0x8] sm:$0xff] }
  0x6d   :  { %v240_v53 = vadd.f32 %v224_v45, %v76_v50  ;;  %v81_v45 = vld [vmem:[#allocation6] sm:$0xff] }
  0x70   :  { %v167_v44 = vpop.permute.xlu2 %166 }
  0x71   :  { %v207_v46 = vmul.f32 %v497_v17, %v167_v44 }
  0x73   :  { %v223_v51 = vmul.f32 %v207_v46, %v91_v48  ;;  %v66_v46 = vld [vmem:[%s576_s1 + $0x8] sm:$0xff] }
  0x75   :  { %v239_v59 = vadd.f32 %v223_v51, %v75_v56  ;;  %v246_v51 = vld [vmem:[#allocation3] sm:$0xff] }
  0x78   :  { %v152_v62 = vpop.permute.xlu2 %151 }
  0x79   :  { %v204_v63 = vmul.f32 %v497_v17, %v152_v62 }
  0x7b   :  { %v220_v5 = vmul.f32 %v204_v63, %v88_v2 }
  0x7d   :  { %v236_v13 = vadd.f32 %v220_v5, %v72_v10 }
  0x7f   :  { %v192_v18 = vpop.permute.xlu0 %191 }
  0x80   :  { %v182_v19 = vpop.permute.xlu1 %181  ;;  %v212_v21 = vmul.f32 %v497_v17, %v192_v18  ;;  %v137_v16 = vpop.permute.xlu2 %136 }
  0x81   :  { %v210_v27 = vmul.f32 %v497_v17, %v182_v19  ;;  %v201_v18 = vmul.f32 %v497_v17, %v137_v16 }
  0x82   :  { %v228_v23 = vmul.f32 %v212_v21, %v96_v20  ;;  %v85_v21 = vld [vmem:[#allocation6 + $0x20] sm:$0xff] }
  0x83   :  { %v226_v34 = vmul.f32 %v210_v27, %v94_v30  ;;  %v84_v27 = vld [vmem:[#allocation6 + $0x18] sm:$0xff] }
  0x84   :  { %v244_v24 = vadd.f32 %v228_v23, %v80_v22  ;;  %v70_v23 = vld [vmem:[%s576_s1 + $0x28] sm:$0xff] }
  0x85   :  { %v242_v41 = vadd.f32 %v226_v34, %v78_v38  ;;  %v83_v34 = vld [vmem:[#allocation6 + $0x10] sm:$0xff] }
  0x86   :  { %247 = vmatpush.xpose.msra.mxu0 %v244_v24  ;;  %v217_v24 = vmul.f32 %v201_v18, %v85_v21 }
  0x87   :  { %v187_v25 = vpop.permute.xlu0 %186 }
  0x88   :  { %v211_v28 = vmul.f32 %v497_v17, %v187_v25  ;;  %v177_v31 = vpop.permute.xlu1 %176 }
  0x89   :  { %v209_v35 = vmul.f32 %v497_v17, %v177_v31 }
  0x8a   :  { %v227_v33 = vmul.f32 %v211_v28, %v95_v26 }
  0x8b   :  { %v225_v40 = vmul.f32 %v209_v35, %v93_v37  ;;  %v68_v35 = vld [vmem:[%s576_s1 + $0x18] sm:$0xff] }
  0x8c   :  { %v243_v36 = vadd.f32 %v227_v33, %v79_v32  ;;  %v233_v32 = vadd.f32 %v217_v24, %v69_v29  ;;  %v122_v33 = vpop.permute.xlu2 %121 }
  0x8d   :  { %v241_v47 = vadd.f32 %v225_v40, %v77_v43 }
  0x8e   :  { %248 = vmatpush.xpose.msra.mxu0 %v243_v36  ;;  %v198_v36 = vmul.f32 %v497_v17, %v122_v33 }
  0x8f   :  { %v162_v49 = vpop.permute.xlu0 %161 }
  0x90   :  { %v206_v52 = vmul.f32 %v497_v17, %v162_v49  ;;  %v157_v55 = vpop.permute.xlu1 %156  ;;  %v214_v42 = vmul.f32 %v198_v36, %v82_v39  ;;  %v65_v49 = vld [vmem:[%s576_s1] sm:$0xff] }
  0x91   :  { %v205_v58 = vmul.f32 %v497_v17, %v157_v55 }
  0x92   :  { %249 = vmatpush.xpose.msra.mxu0 %v242_v41  ;;  %v222_v57 = vmul.f32 %v206_v52, %v90_v54  ;;  %v67_v41 = vld [vmem:[%s576_s1 + $0x10] sm:$0xff]  ;;  %v230_v48 = vadd.f32 %v214_v42, %v66_v46  ;;  %v274_v52 = vld [vmem:[%s582_s7] sm:$0x1]  ;;  %s394_s1 = smov [#allocation8]  }
  0x93   :  { %v221_v0 = vmul.f32 %v205_v58, %v89_v60  ;;  %v272_v54 = vld [vmem:[%s580_s5] sm:$0x1]  ;;  %s288_s13 = sshll.u32 %s394_s1, 4  ;;  %s289_s13 = int_to_ptr.vmem [resolvable:$true] %s288_s13 }
  0x94   :  { %v238_v1 = vadd.f32 %v222_v57, %v74_v61 }
  0x95   :  { %v237_v7 = vadd.f32 %v221_v0, %v73_v4 }
  0x96   :  { %250 = vmatpush.xpose.msra.mxu0 %v241_v47 }
  0x97   :  { %v147_v3 = vpop.permute.xlu0 %146 }
  0x98   :  { %v203_v6 = vmul.f32 %v497_v17, %v147_v3  ;;  %v142_v9 = vpop.permute.xlu1 %141 }
  0x99   :  { %v202_v12 = vmul.f32 %v497_v17, %v142_v9 }
  0x9a   :  { %251 = vmatpush.xpose.msra.mxu0 %v240_v53  ;;  %v219_v11 = vmul.f32 %v203_v6, %v87_v8 }
  0x9b   :  { %v218_v19 = vmul.f32 %v202_v12, %v86_v14 }
  0x9c   :  { %v235_v20 = vadd.f32 %v219_v11, %v71_v15 }
  0x9d   :  { %v234_v26 = vadd.f32 %v218_v19, %v70_v23 }
  0x9e   :  { %252 = vmatpush.xpose.msra.mxu0 %v239_v59 }
  0x9f   :  { %v132_v22 = vpop.permute.xlu0 %131 }
  0xa0   :  { %v200_v25 = vmul.f32 %v497_v17, %v132_v22  ;;  %v127_v28 = vpop.permute.xlu1 %126 }
  0xa1   :  { %v199_v31 = vmul.f32 %v497_v17, %v127_v28 }
  0xa2   :  { %253 = vmatpush.xpose.msra.mxu0 %v238_v1  ;;  %v216_v30 = vmul.f32 %v200_v25, %v84_v27 }
  0xa3   :  { %v215_v37 = vmul.f32 %v199_v31, %v83_v34 }
  0xa4   :  { %v232_v38 = vadd.f32 %v216_v30, %v68_v35 }
  0xa5   :  { %v231_v44 = vadd.f32 %v215_v37, %v67_v41 }
  0xa6   :  { %254 = vmatpush.xpose.msra.mxu0 %v237_v7 }
  0xa7   :  { %v117_v40 = vpop.permute.xlu0 %116 }
  0xa8   :  { %v197_v43 = vmul.f32 %v497_v17, %v117_v40  ;;  %v273_v17 = vld [vmem:[%s581_s6] sm:$0x1] }
  0xa9   :  { %v275_v53 = vmul.f32 %v274_v52, %v273_v17 }
  0xaa   :  { %255 = vmatpush.xpose.msra.mxu0 %v236_v13  ;;  %v213_v47 = vmul.f32 %v197_v43, %v81_v45 }
  0xab   :  { %v276_v55 = vadd.f32 %v275_v53, %v272_v54 }
  0xac   :  { %v229_v50 = vadd.f32 %v213_v47, %v65_v49 }
  0xad   :  { %v279_v56 = vperm.slane %v276_v55, 0 }
  0xae   :  { %256 = vmatpush.xpose.msra.mxu0 %v235_v20 }
  0xb2   :  { %257 = vmatpush.xpose.msra.mxu0 %v234_v26 }
  0xb6   :  { %258 = vmatpush.xpose.msra.mxu0 %v233_v32 }
  0xba   :  { %259 = vmatpush.xpose.msra.mxu0 %v232_v38 }
  0xbe   :  { %260 = vmatpush.xpose.msra.mxu0 %v231_v44 }
  0xc2   :  { %261 = vmatpush.xpose.msra.mxu0 %v230_v48 }
  0xc6   :  { %262 = vmatpush.xpose.msra.mxu0 %v229_v50 }
  0xc9   :  { %263 = vmatmul.f32.vlgmr.msra.gmra.mxu0 %v246_v51 }
 0x146   :  { %v264_v57 = vpop.f32.mrf.mxu0 }
 0x147   :  { %v281_v58 = vadd.f32 %v279_v56, %v264_v57 }
 0x149   :  { %282 = vst [vmem:[#allocation8] sm:$0xff] %v281_v58 }
 0x14a   :  { %293 = dma.vmem_to_hbm [thread:$0]  %s289_s13, 128, %s291_s16, [#allocation5]  }
 0x14b   :  { %387 = dma.done.wait [#allocation5], 128  }
 0x14c   :  { %388 = vsyncadd [#allocation5], 4294967168 }
 0x14d   :  { %298 = vsyncpa [#allocation4], 1 }
 0x14e   :  { %299 = vsyncpa [#allocation7], 1 }
 0x14f   :  { %300 = vsyncpa [#allocation5], 1 }

</bundles_post_ra>
